<compile_context>
chip_gen: v5e
topology: v5e:2x2
jax: 0.10.0
libtpu: 0.0.40
codegen_flags: <defaults>
</compile_context>

<pallas_src>
import jax
import jax.numpy as jnp
from jax.experimental import pallas as pl
from jax.experimental.pallas import tpu as pltpu

_LANE = 128
_SUBLANE = 8
_MAX_SINGLE_TILE_ROWS = 1024   # single-grid-step fast path up to this many rows


def _round_up(n, m):
    return ((n + m - 1) // m) * m


def _choose_batch_tiling(batch, max_tile_rows=_MAX_SINGLE_TILE_ROWS):
    """Pick (tile_rows, n_tiles). Small B: one tile, 8-aligned. Large B: 128-aligned
    tiles with an even tile count so v7x's 2 TensorCores split the grid evenly."""
    if batch <= max_tile_rows:
        return _round_up(batch, _SUBLANE), 1
    n_tiles = -(-batch // max_tile_rows)          # cdiv
    if n_tiles % 2:
        n_tiles += 1                              # even count -> balanced megacore split
    tb = _round_up(-(-batch // n_tiles), _LANE)   # 128-aligned: out store stays unmasked
    return tb, n_tiles


def _mlp_kernel(x_ref,
                w1_ref, b1_ref,
                w2_ref, b2_ref,
                w3_ref, b3_ref,
                w4_ref, b4_ref,
                out_ref):
    """One batch tile: x_ref is [tb, Din] (f32); weights are VMEM-resident blocks."""
    cdt = w1_ref.dtype                 # MXU input dtype (f32 or bf16); acc is f32.

    # Cast x in-vreg (no wrapper-side cast / extra HBM round trip of x).
    x = x_ref[...].astype(cdt)

    # fc1 + relu   (dropout1 == identity at inference)
    h = jnp.dot(x, w1_ref[...], preferred_element_type=jnp.float32)
    h = jnp.maximum(h + b1_ref[...], 0.0).astype(cdt)

    # fc2 + relu   (dropout2 == identity at inference)
    h = jnp.dot(h, w2_ref[...], preferred_element_type=jnp.float32)
    h = jnp.maximum(h + b2_ref[...], 0.0).astype(cdt)

    # fc3 + relu
    h = jnp.dot(h, w3_ref[...], preferred_element_type=jnp.float32)
    h = jnp.maximum(h + b3_ref[...], 0.0).astype(cdt)

    # fc4 + sigmoid, computed transposed: [8, D3] . [tb, D3]^T -> [8, tb].
    # Batch lands on the lane axis (lane-dense stores). Only row 0 is real output;
    # rows 1..7 (zero-padded fc4 rows) are explicitly zeroed below.
    logits = jax.lax.dot_general(
        w4_ref[...], h, (((1,), (1,)), ((), ())),
        preferred_element_type=jnp.float32)
    probs = jax.nn.sigmoid(logits + b4_ref[...])
    row = jax.lax.broadcasted_iota(jnp.int32, probs.shape, 0)
    out_ref[...] = jnp.where(row == 0, probs, 0.0)


def prepare_params(params, dtype=jnp.float32):
    """One-time parameter prep (call at load time, NOT per forward).
    PyTorch-layout [out,in] Linear weights -> kernel layout, zero-padded to the
    128-lane granule; weights cast to `dtype` (jnp.bfloat16 on v6e/v7x, keep f32 on
    v5e), biases kept f32 (padded entries zero, so padded lanes stay 0 after ReLU)."""
    (w1, b1), (w2, b2), (w3, b3), (w4, b4) = params
    din = _round_up(w1.shape[1], _LANE)
    d1 = _round_up(w1.shape[0], _LANE)
    d2 = _round_up(w2.shape[0], _LANE)
    d3 = _round_up(w3.shape[0], _LANE)

    def padw(w, rows, cols):
        return jnp.pad(w, ((0, rows - w.shape[0]), (0, cols - w.shape[1]))).astype(dtype)

    def padb(b, n):
        return jnp.pad(b, (0, n - b.shape[0])).astype(jnp.float32).reshape(1, n)

    w1p = padw(w1.T, din, d1)
    w2p = padw(w2.T, d1, d2)
    w3p = padw(w3.T, d2, d3)
    w4p = padw(w4, _SUBLANE, d3)                     # keep [out,in]; pad 1 row -> 8
    b4p = jnp.zeros((_SUBLANE, 1), jnp.float32).at[0, 0].set(b4[0])
    return (w1p, padb(b1, d1), w2p, padb(b2, d2), w3p, padb(b3, d3), w4p, b4p)


@jax.jit
def simple_nn_classifier_forward(x, prep):
    """Batched fused forward. `prep` from prepare_params (transposed, padded, cast).
    Returns (B, 1) f32 sigmoid probabilities."""
    w1, b1, w2, b2, w3, b3, w4, b4 = prep
    B, din_in = x.shape
    din, d1 = w1.shape
    d2, d3 = w3.shape
    wdtype = w1.dtype

    tb, n_tiles = _choose_batch_tiling(B)
    bp = tb * n_tiles
    pad_rows, pad_cols = bp - B, din - din_in
    if pad_rows or pad_cols:                          # single fused pad, often a no-op
        x = jnp.pad(x, ((0, pad_rows), (0, pad_cols)))

    witem = jnp.dtype(wdtype).itemsize
    cost = pl.CostEstimate(
        flops=2 * bp * (din * d1 + d1 * d2 + d2 * d3 + d3 * _SUBLANE),
        transcendentals=_SUBLANE * bp,
        bytes_accessed=(x.size * 4
                        + (w1.size + w2.size + w3.size + w4.size) * witem
                        + (b1.size + b2.size + b3.size + b4.size) * 4
                        + _SUBLANE * bp * 4),
    )

    def resident(shape):                              # grid-invariant: DMA'd once,
        return pl.BlockSpec(shape, lambda i: (0, 0))  # VMEM-resident across steps

    out = pl.pallas_call(
        _mlp_kernel,
        grid=(n_tiles,),
        in_specs=[
            pl.BlockSpec((tb, din), lambda i: (i, 0)),          # x: tiled over batch
            resident((din, d1)), resident((1, d1)),             # fc1
            resident((d1, d2)), resident((1, d2)),              # fc2
            resident((d2, d3)), resident((1, d3)),              # fc3
            resident((_SUBLANE, d3)), resident((_SUBLANE, 1)),  # fc4
        ],
        out_specs=pl.BlockSpec((_SUBLANE, tb), lambda i: (0, i)),  # lane-dense slab
        out_shape=jax.ShapeDtypeStruct((_SUBLANE, bp), jnp.float32),
        compiler_params=pltpu.CompilerParams(
            dimension_semantics=("parallel",)),       # v7x: 2 TCs split batch tiles
        cost_estimate=cost,
    )(x, w1, b1, w2, b2, w3, b3, w4, b4)

    return out[0, :B].reshape(B, 1)


def init_params(key, input_size, fc1_out, fc2_out, fc3_out):
    """Deterministic nn.Linear-style init: W,b ~ U(-1/sqrt(fan_in), 1/sqrt(fan_in))."""
    def linear(key, fan_in, fan_out):
        kw, kb = jax.random.split(key)
        bound = 1.0 / jnp.sqrt(fan_in)
        w = jax.random.uniform(kw, (fan_out, fan_in), jnp.float32, -bound, bound)
        b = jax.random.uniform(kb, (fan_out,), jnp.float32, -bound, bound)
        return w, b

    k1, k2, k3, k4 = jax.random.split(key, 4)
    return (
        linear(k1, input_size, fc1_out),
        linear(k2, fc1_out, fc2_out),
        linear(k3, fc2_out, fc3_out),
        linear(k4, fc3_out, 1),
    )


def reference_forward(x, params):
    """Pure-JAX reference matching the PyTorch forward (eval mode)."""
    (w1, b1), (w2, b2), (w3, b3), (w4, b4) = params
    h = jnp.maximum(x @ w1.T + b1, 0.0)
    h = jnp.maximum(h @ w2.T + b2, 0.0)
    h = jnp.maximum(h @ w3.T + b3, 0.0)
    return jax.nn.sigmoid(h @ w4.T + b4)


if __name__ == "__main__":
    # TODO(synk): hub.load()/transform() (TF-Hub USE sentence embeddings) is external
    # I/O and out of scope; the kernel consumes the embedding vectors directly.
    key = jax.random.PRNGKey(0)
    kx, kp = jax.random.split(key)

    B = 300                       # not a multiple of 8: exercises the 300->304 pad
    INPUT_SIZE, FC1_OUT, FC2_OUT, FC3_OUT = 128, 128, 64, 32

    x = jax.random.normal(kx, (B, INPUT_SIZE), jnp.float32)
    params = init_params(kp, INPUT_SIZE, FC1_OUT, FC2_OUT, FC3_OUT)
    ref = reference_forward(x, params)

    # f32 weights/activations (v5e-friendly default) -- single grid step, 304 rows.
    prep_f32 = prepare_params(params, dtype=jnp.float32)
    out = jax.block_until_ready(simple_nn_classifier_forward(x, prep_f32))
    assert out.shape == (B, 1), out.shape
    assert jnp.allclose(out, ref, atol=1e-4, rtol=1e-4), "f32 mismatch vs reference"

    # bf16 weights/activations (v6e/v7x MXU + halved weight DMA), f32 accumulation;
    # x stays f32 in HBM and is cast to bf16 inside the kernel.
    prep_bf16 = prepare_params(params, dtype=jnp.bfloat16)
    out_bf16 = jax.block_until_ready(simple_nn_classifier_forward(x, prep_bf16))
    assert out_bf16.shape == (B, 1)
    assert float(jnp.max(jnp.abs(out_bf16 - ref))) < 3e-2, "bf16 mismatch vs reference"

    print("KERNEL_OK")
</pallas_src>

<mosaic_0001>
module attributes {stable_mosaic.version = 11 : i64} {
  func.func @_mlp_kernel(%arg0: i32, %arg1: memref<304x128xf32, #tpu.memory_space<vmem>>, %arg2: memref<128x128xf32, #tpu.memory_space<vmem>>, %arg3: memref<1x128xf32, #tpu.memory_space<vmem>>, %arg4: memref<128x128xf32, #tpu.memory_space<vmem>>, %arg5: memref<1x128xf32, #tpu.memory_space<vmem>>, %arg6: memref<128x128xf32, #tpu.memory_space<vmem>>, %arg7: memref<1x128xf32, #tpu.memory_space<vmem>>, %arg8: memref<8x128xf32, #tpu.memory_space<vmem>>, %arg9: memref<8x1xf32, #tpu.memory_space<vmem>>, %arg10: memref<8x304xf32, #tpu.memory_space<vmem>>) attributes {dimension_semantics = [#tpu.dimension_semantics<parallel>], iteration_bounds = array<i64: 1>, scalar_prefetch = 0 : i64, scratch_operands = 0 : i64, tpu.core_type = #tpu.core_type<tc>, window_params = [{transform_indices = @transform_0, window_bounds = array<i64: 304, 128>}, {pipeline_mode = #tpu.pipeline_mode<synchronous>, transform_indices = @transform_1, window_bounds = array<i64: 128, 128>}, {pipeline_mode = #tpu.pipeline_mode<synchronous>, transform_indices = @transform_2, window_bounds = array<i64: 1, 128>}, {pipeline_mode = #tpu.pipeline_mode<synchronous>, transform_indices = @transform_3, window_bounds = array<i64: 128, 128>}, {pipeline_mode = #tpu.pipeline_mode<synchronous>, transform_indices = @transform_4, window_bounds = array<i64: 1, 128>}, {pipeline_mode = #tpu.pipeline_mode<synchronous>, transform_indices = @transform_5, window_bounds = array<i64: 128, 128>}, {pipeline_mode = #tpu.pipeline_mode<synchronous>, transform_indices = @transform_6, window_bounds = array<i64: 1, 128>}, {pipeline_mode = #tpu.pipeline_mode<synchronous>, transform_indices = @transform_7, window_bounds = array<i64: 8, 128>}, {pipeline_mode = #tpu.pipeline_mode<synchronous>, transform_indices = @transform_8, window_bounds = array<i64: 8, 1>}, {transform_indices = @transform_9, window_bounds = array<i64: 8, 304>}]} {
    %c0 = arith.constant 0 : index
    %c0_0 = arith.constant 0 : index
    %0 = vector.load %arg1[%c0, %c0_0] : memref<304x128xf32, #tpu.memory_space<vmem>>, vector<304x128xf32>
    %c0_1 = arith.constant 0 : index
    %c0_2 = arith.constant 0 : index
    %1 = vector.load %arg2[%c0_1, %c0_2] : memref<128x128xf32, #tpu.memory_space<vmem>>, vector<128x128xf32>
    %cst = arith.constant dense<0.000000e+00> : vector<304x128xf32>
    %2 = tpu.matmul %0, %1, %cst {dimension_numbers = #tpu.dot_dimension_numbers<[1], [0], [0], [1], [0, 0, 1, 1], [], []>} : vector<304x128xf32>, vector<128x128xf32>, vector<304x128xf32> -> vector<304x128xf32>
    %c0_3 = arith.constant 0 : index
    %c0_4 = arith.constant 0 : index
    %3 = vector.load %arg3[%c0_3, %c0_4] : memref<1x128xf32, #tpu.memory_space<vmem>>, vector<1x128xf32>
    %4 = vector.broadcast %3 : vector<1x128xf32> to vector<304x128xf32>
    %5 = arith.addf %2, %4 : vector<304x128xf32>
    %cst_5 = arith.constant 0.000000e+00 : f32
    %6 = vector.broadcast %cst_5 : f32 to vector<304x128xf32>
    %7 = arith.maximumf %5, %6 : vector<304x128xf32>
    %c0_6 = arith.constant 0 : index
    %c0_7 = arith.constant 0 : index
    %8 = vector.load %arg4[%c0_6, %c0_7] : memref<128x128xf32, #tpu.memory_space<vmem>>, vector<128x128xf32>
    %cst_8 = arith.constant dense<0.000000e+00> : vector<304x128xf32>
    %9 = tpu.matmul %7, %8, %cst_8 {dimension_numbers = #tpu.dot_dimension_numbers<[1], [0], [0], [1], [0, 0, 1, 1], [], []>} : vector<304x128xf32>, vector<128x128xf32>, vector<304x128xf32> -> vector<304x128xf32>
    %c0_9 = arith.constant 0 : index
    %c0_10 = arith.constant 0 : index
    %10 = vector.load %arg5[%c0_9, %c0_10] : memref<1x128xf32, #tpu.memory_space<vmem>>, vector<1x128xf32>
    %11 = vector.broadcast %10 : vector<1x128xf32> to vector<304x128xf32>
    %12 = arith.addf %9, %11 : vector<304x128xf32>
    %cst_11 = arith.constant 0.000000e+00 : f32
    %13 = vector.broadcast %cst_11 : f32 to vector<304x128xf32>
    %14 = arith.maximumf %12, %13 : vector<304x128xf32>
    %c0_12 = arith.constant 0 : index
    %c0_13 = arith.constant 0 : index
    %15 = vector.load %arg6[%c0_12, %c0_13] : memref<128x128xf32, #tpu.memory_space<vmem>>, vector<128x128xf32>
    %cst_14 = arith.constant dense<0.000000e+00> : vector<304x128xf32>
    %16 = tpu.matmul %14, %15, %cst_14 {dimension_numbers = #tpu.dot_dimension_numbers<[1], [0], [0], [1], [0, 0, 1, 1], [], []>} : vector<304x128xf32>, vector<128x128xf32>, vector<304x128xf32> -> vector<304x128xf32>
    %c0_15 = arith.constant 0 : index
    %c0_16 = arith.constant 0 : index
    %17 = vector.load %arg7[%c0_15, %c0_16] : memref<1x128xf32, #tpu.memory_space<vmem>>, vector<1x128xf32>
    %18 = vector.broadcast %17 : vector<1x128xf32> to vector<304x128xf32>
    %19 = arith.addf %16, %18 : vector<304x128xf32>
    %cst_17 = arith.constant 0.000000e+00 : f32
    %20 = vector.broadcast %cst_17 : f32 to vector<304x128xf32>
    %21 = arith.maximumf %19, %20 : vector<304x128xf32>
    %c0_18 = arith.constant 0 : index
    %c0_19 = arith.constant 0 : index
    %22 = vector.load %arg8[%c0_18, %c0_19] : memref<8x128xf32, #tpu.memory_space<vmem>>, vector<8x128xf32>
    %cst_20 = arith.constant dense<0.000000e+00> : vector<8x304xf32>
    %23 = tpu.matmul %22, %21, %cst_20 {dimension_numbers = #tpu.dot_dimension_numbers<[1], [1], [0], [0], [0, 0, 1, 0], [], []>} : vector<8x128xf32>, vector<304x128xf32>, vector<8x304xf32> -> vector<8x304xf32>
    %c0_21 = arith.constant 0 : index
    %c0_22 = arith.constant 0 : index
    %24 = vector.load %arg9[%c0_21, %c0_22] : memref<8x1xf32, #tpu.memory_space<vmem>>, vector<8x1xf32>
    %25 = vector.broadcast %24 : vector<8x1xf32> to vector<8x304xf32>
    %26 = arith.addf %23, %25 : vector<8x304xf32>
    %27 = arith.negf %26 : vector<8x304xf32>
    %28 = math.exp %27 : vector<8x304xf32>
    %cst_23 = arith.constant 1.000000e+00 : f32
    %29 = vector.broadcast %cst_23 : f32 to vector<8x304xf32>
    %30 = arith.addf %29, %28 : vector<8x304xf32>
    %31 = arith.divf %29, %30 : vector<8x304xf32>
    %32 = tpu.iota {dimensions = array<i32: 0>} : vector<8x304xi32>
    %c0_i32 = arith.constant 0 : i32
    %33 = vector.broadcast %c0_i32 : i32 to vector<8x304xi32>
    %34 = arith.cmpi eq, %32, %33 : vector<8x304xi32>
    %cst_24 = arith.constant 0.000000e+00 : f32
    %35 = vector.broadcast %cst_24 : f32 to vector<8x304xf32>
    %36 = arith.select %34, %31, %35 : vector<8x304xi1>, vector<8x304xf32>
    %c0_25 = arith.constant 0 : index
    %c0_26 = arith.constant 0 : index
    %37 = vector.load %arg10[%c0_25, %c0_26] : memref<8x304xf32, #tpu.memory_space<vmem>>, vector<8x304xf32>
    tpu.vector_store %arg10[%c0_25, %c0_26], %36 {strides = array<i32>} : memref<8x304xf32, #tpu.memory_space<vmem>>, vector<8x304xf32>,
    return
  }
  func.func @transform_0(%arg0: i32) -> (i32, i32) {
    %c0_i32 = arith.constant 0 : i32
    %c0_i32_0 = arith.constant 0 : i32
    return %arg0, %c0_i32 : i32, i32
  }
  func.func @transform_1(%arg0: i32) -> (i32, i32) {
    %c0_i32 = arith.constant 0 : i32
    %c0_i32_0 = arith.constant 0 : i32
    %c0_i32_1 = arith.constant 0 : i32
    return %c0_i32, %c0_i32_0 : i32, i32
  }
  func.func @transform_2(%arg0: i32) -> (i32, i32) {
    %c0_i32 = arith.constant 0 : i32
    %c0_i32_0 = arith.constant 0 : i32
    %c0_i32_1 = arith.constant 0 : i32
    return %c0_i32, %c0_i32_0 : i32, i32
  }
  func.func @transform_3(%arg0: i32) -> (i32, i32) {
    %c0_i32 = arith.constant 0 : i32
    %c0_i32_0 = arith.constant 0 : i32
    %c0_i32_1 = arith.constant 0 : i32
    return %c0_i32, %c0_i32_0 : i32, i32
  }
  func.func @transform_4(%arg0: i32) -> (i32, i32) {
    %c0_i32 = arith.constant 0 : i32
    %c0_i32_0 = arith.constant 0 : i32
    %c0_i32_1 = arith.constant 0 : i32
    return %c0_i32, %c0_i32_0 : i32, i32
  }
  func.func @transform_5(%arg0: i32) -> (i32, i32) {
    %c0_i32 = arith.constant 0 : i32
    %c0_i32_0 = arith.constant 0 : i32
    %c0_i32_1 = arith.constant 0 : i32
    return %c0_i32, %c0_i32_0 : i32, i32
  }
  func.func @transform_6(%arg0: i32) -> (i32, i32) {
    %c0_i32 = arith.constant 0 : i32
    %c0_i32_0 = arith.constant 0 : i32
    %c0_i32_1 = arith.constant 0 : i32
    return %c0_i32, %c0_i32_0 : i32, i32
  }
  func.func @transform_7(%arg0: i32) -> (i32, i32) {
    %c0_i32 = arith.constant 0 : i32
    %c0_i32_0 = arith.constant 0 : i32
    %c0_i32_1 = arith.constant 0 : i32
    return %c0_i32, %c0_i32_0 : i32, i32
  }
  func.func @transform_8(%arg0: i32) -> (i32, i32) {
    %c0_i32 = arith.constant 0 : i32
    %c0_i32_0 = arith.constant 0 : i32
    %c0_i32_1 = arith.constant 0 : i32
    return %c0_i32, %c0_i32_0 : i32, i32
  }
  func.func @transform_9(%arg0: i32) -> (i32, i32) {
    %c0_i32 = arith.constant 0 : i32
    %c0_i32_0 = arith.constant 0 : i32
    return %c0_i32, %arg0 : i32, i32
  }
}

</mosaic_0001>

<bundles_post_ra>
// kernel: simple_nn_classifier_forward.1
= control target key start
LH: loop header
LB: loop body
LE: loop exit
PB: predicated region body
PF: predicated region fallthrough
CT: control target
= control target key end

     0   :  { %vm769_vm13 = vcmask 392192   ;;  %s1304_s1 = inlined_call_operand.vmem [shape: f32[128,128], index: 1, kind: input, shape index: {}]   ;;  %s1305_s2 = inlined_call_operand.vmem [shape: f32[1,128], index: 2, kind: input, shape index: {}]   ;;  %s1306_s0 = inlined_call_operand.vmem [shape: f32[304,128], index: 0, kind: input, shape index: {}]   ;;  %s1307_s3 = inlined_call_operand.vmem [shape: f32[128,128], index: 3, kind: input, shape index: {}]   ;;  %s1308_s4 = inlined_call_operand.vmem [shape: f32[1,128], index: 4, kind: input, shape index: {}]   ;;  %s1309_s5 = inlined_call_operand.vmem [shape: f32[128,128], index: 5, kind: input, shape index: {}]   ;;  %s1310_s6 = inlined_call_operand.vmem [shape: f32[1,128], index: 6, kind: input, shape index: {}]   ;;  %s1311_s7 = inlined_call_operand.vmem [shape: f32[8,128], index: 7, kind: input, shape index: {}]   ;;  %s1312_s8 = inlined_call_operand.vmem [shape: f32[8,1], index: 8, kind: input, shape index: {}]   ;;  %s1313_s9 = inlined_call_operand.vmem [shape: f32[8,304], index: 9, kind: output, shape index: {}]  }
   0x1   :  { %v85_v0 = vld [vmem:[%s1304_s1 + $0x78] sm:$0xff]  ;;  %v84_v1 = vld [vmem:[%s1304_s1 + $0x70] sm:$0xff]  ;;  %v83_v2 = vld [vmem:[%s1304_s1 + $0x68] sm:$0xff] }
   0x2   :  { %90 = vmatpush.msra.mxu0 %v85_v0  ;;  %v82_v3 = vld [vmem:[%s1304_s1 + $0x60] sm:$0xff]  ;;  %v81_v4 = vld [vmem:[%s1304_s1 + $0x58] sm:$0xff]  ;;  %v80_v5 = vld [vmem:[%s1304_s1 + $0x50] sm:$0xff] }
   0x3   :  { %v79_v6 = vld [vmem:[%s1304_s1 + $0x48] sm:$0xff]  ;;  %v78_v7 = vld [vmem:[%s1304_s1 + $0x40] sm:$0xff]  ;;  %v77_v8 = vld [vmem:[%s1304_s1 + $0x38] sm:$0xff] }
   0x4   :  { %91 = vmatpush.msra.mxu0 %v84_v1  ;;  %v76_v9 = vld [vmem:[%s1304_s1 + $0x30] sm:$0xff]  ;;  %v75_v10 = vld [vmem:[%s1304_s1 + $0x28] sm:$0xff]  ;;  %v74_v11 = vld [vmem:[%s1304_s1 + $0x20] sm:$0xff] }
   0x5   :  { %v73_v12 = vld [vmem:[%s1304_s1 + $0x18] sm:$0xff]  ;;  %v72_v13 = vld [vmem:[%s1304_s1 + $0x10] sm:$0xff]  ;;  %v71_v14 = vld [vmem:[%s1304_s1 + $0x8] sm:$0xff] }
   0x6   :  { %92 = vmatpush.msra.mxu0 %v83_v2  ;;  %v70_v15 = vld [vmem:[%s1304_s1] sm:$0xff]  ;;  %v33_v17 = vld [vmem:[%s1306_s0 + $0x8] sm:$0xff]  ;;  %v34_v18 = vld [vmem:[%s1306_s0 + $0x10] sm:$0xff] }
   0x7   :  { %v32_v16 = vld [vmem:[%s1306_s0] sm:$0xff]  ;;  %v35_v19 = vld [vmem:[%s1306_s0 + $0x18] sm:$0xff]  ;;  %v37_v21 = vld [vmem:[%s1306_s0 + $0x28] sm:$0xff] }
   0x8   :  { %93 = vmatpush.msra.mxu0 %v82_v3  ;;  %v36_v20 = vld [vmem:[%s1306_s0 + $0x20] sm:$0xff]  ;;  %v38_v22 = vld [vmem:[%s1306_s0 + $0x30] sm:$0xff]  ;;  %v39_v23 = vld [vmem:[%s1306_s0 + $0x38] sm:$0xff] }
   0x9   :  { %v40_v24 = vld [vmem:[%s1306_s0 + $0x40] sm:$0xff]  ;;  %v274_v25 = vld [vmem:[%s1307_s3 + $0x78] sm:$0xff]  ;;  %v273_v26 = vld [vmem:[%s1307_s3 + $0x70] sm:$0xff] }
   0xa   :  { %94 = vmatpush.msra.mxu0 %v81_v4  ;;  %279 = vmatpush.msra.mxu1 %v274_v25  ;;  %v272_v27 = vld [vmem:[%s1307_s3 + $0x68] sm:$0xff]  ;;  %v271_v29 = vld [vmem:[%s1307_s3 + $0x60] sm:$0xff]  ;;  %v270_v30 = vld [vmem:[%s1307_s3 + $0x58] sm:$0xff] }
   0xb   :  { %v41_v28 = vld [vmem:[%s1306_s0 + $0x48] sm:$0xff]  ;;  %v269_v31 = vld [vmem:[%s1307_s3 + $0x50] sm:$0xff]  ;;  %v267_v34 = vld [vmem:[%s1307_s3 + $0x40] sm:$0xff] }
   0xc   :  { %95 = vmatpush.msra.mxu0 %v80_v5  ;;  %280 = vmatpush.msra.mxu1 %v273_v26  ;;  %v268_v32 = vld [vmem:[%s1307_s3 + $0x48] sm:$0xff]  ;;  %v42_v33 = vld [vmem:[%s1306_s0 + $0x50] sm:$0xff]  ;;  %v266_v35 = vld [vmem:[%s1307_s3 + $0x38] sm:$0xff] }
   0xd   :  { %v265_v36 = vld [vmem:[%s1307_s3 + $0x30] sm:$0xff]  ;;  %v264_v37 = vld [vmem:[%s1307_s3 + $0x28] sm:$0xff]  ;;  %v43_v38 = vld [vmem:[%s1306_s0 + $0x58] sm:$0xff] }
   0xe   :  { %96 = vmatpush.msra.mxu0 %v79_v6  ;;  %281 = vmatpush.msra.mxu1 %v272_v27  ;;  %v263_v39 = vld [vmem:[%s1307_s3 + $0x20] sm:$0xff]  ;;  %v262_v40 = vld [vmem:[%s1307_s3 + $0x18] sm:$0xff]  ;;  %v261_v41 = vld [vmem:[%s1307_s3 + $0x10] sm:$0xff] }
   0xf   :  { %v44_v42 = vld [vmem:[%s1306_s0 + $0x60] sm:$0xff]  ;;  %v260_v43 = vld [vmem:[%s1307_s3 + $0x8] sm:$0xff]  ;;  %v46_v46 = vld [vmem:[%s1306_s0 + $0x70] sm:$0xff] }
  0x10   :  { %97 = vmatpush.msra.mxu0 %v78_v7  ;;  %282 = vmatpush.msra.mxu1 %v271_v29  ;;  %v259_v44 = vld [vmem:[%s1307_s3] sm:$0xff]  ;;  %v45_v45 = vld [vmem:[%s1306_s0 + $0x68] sm:$0xff]  ;;  %v47_v47 = vld [vmem:[%s1306_s0 + $0x78] sm:$0xff] }
  0x11   :  { %v993_v48 = vld [vmem:[%s1305_s2] ss:$0 sm:$0xff]  ;;  %v49_v54 = vld [vmem:[%s1306_s0 + $0x88] sm:$0xff]  ;;  %v50_v58 = vld [vmem:[%s1306_s0 + $0x90] sm:$0xff] }
  0x12   :  { %98 = vmatpush.msra.mxu0 %v77_v8  ;;  %283 = vmatpush.msra.mxu1 %v270_v30  ;;  %v48_v50 = vld [vmem:[%s1306_s0 + $0x80] sm:$0xff]  ;;  %v51_v62 = vld [vmem:[%s1306_s0 + $0x98] sm:$0xff]  ;;  %v53_v6 = vld [vmem:[%s1306_s0 + $0xa8] sm:$0xff] }
  0x13   :  { %v52_v2 = vld [vmem:[%s1306_s0 + $0xa0] sm:$0xff]  ;;  %v462_v25 = vld [vmem:[%s1309_s5 + $0x70] sm:$0xff]  ;;  %v461_v27 = vld [vmem:[%s1309_s5 + $0x68] sm:$0xff] }
  0x14   :  { %99 = vmatpush.msra.mxu0 %v76_v9  ;;  %284 = vmatpush.msra.mxu1 %v269_v31  ;;  %v459_v29 = vld [vmem:[%s1309_s5 + $0x58] sm:$0xff]  ;;  %v58_v31 = vld [vmem:[%s1306_s0 + $0xd0] sm:$0xff] }
  0x16   :  { %100 = vmatpush.msra.mxu0 %v75_v10  ;;  %285 = vmatpush.msra.mxu1 %v268_v32  ;;  %v54_v10 = vld [vmem:[%s1306_s0 + $0xb0] sm:$0xff] }
  0x18   :  { %101 = vmatpush.msra.mxu0 %v74_v11  ;;  %286 = vmatpush.msra.mxu1 %v267_v34 }
  0x1a   :  { %102 = vmatpush.msra.mxu0 %v73_v12  ;;  %287 = vmatpush.msra.mxu1 %v266_v35  ;;  %v457_v35 = vld [vmem:[%s1309_s5 + $0x48] sm:$0xff] }
  0x1c   :  { %103 = vmatpush.msra.mxu0 %v72_v13  ;;  %288 = vmatpush.msra.mxu1 %v265_v36  ;;  %v456_v36 = vld [vmem:[%s1309_s5 + $0x40] sm:$0xff] }
  0x1e   :  { %104 = vmatpush.msra.mxu0 %v71_v14  ;;  %289 = vmatpush.msra.mxu1 %v264_v37  ;;  %v55_v14 = vld [vmem:[%s1306_s0 + $0xb8] sm:$0xff] }
  0x1f   :  { %v455_v37 = vld [vmem:[%s1309_s5 + $0x38] sm:$0xff] }
  0x20   :  { %105 = vmatpush.msra.mxu0 %v70_v15  ;;  %290 = vmatpush.msra.mxu1 %v263_v39  ;;  %v59_v39 = vld [vmem:[%s1306_s0 + $0xd8] sm:$0xff] }
  0x21   :  { %106 = vmatmul.f32.vlgmr.msra.gmra.mxu0 %v32_v16 }
  0x22   :  { %291 = vmatpush.msra.mxu1 %v262_v40 }
  0x24   :  { %292 = vmatpush.msra.mxu1 %v261_v41  ;;  %v454_v41 = vld [vmem:[%s1309_s5 + $0x30] sm:$0xff] }
  0x26   :  { %293 = vmatpush.msra.mxu1 %v260_v43  ;;  %v453_v43 = vld [vmem:[%s1309_s5 + $0x28] sm:$0xff] }
  0x28   :  { %294 = vmatpush.msra.mxu1 %v259_v44  ;;  %v452_v44 = vld [vmem:[%s1309_s5 + $0x20] sm:$0xff] }
  0x29   :  { %109 = vmatmul.f32.gmra.mxu0 %v33_v17 }
  0x31   :  { %112 = vmatmul.f32.gmra.mxu0 %v34_v18  ;;  %v56_v18 = vld [vmem:[%s1306_s0 + $0xc0] sm:$0xff] }
  0x39   :  { %115 = vmatmul.f32.gmra.mxu0 %v35_v19 }
  0x41   :  { %118 = vmatmul.f32.gmra.mxu0 %v36_v20 }
  0x49   :  { %121 = vmatmul.f32.gmra.mxu0 %v37_v21  ;;  %v463_v21 = vld [vmem:[%s1309_s5 + $0x78] sm:$0xff] }
  0x4a   :  { %468 = vmatpush.msra.mxu2 %v463_v21 }
  0x4c   :  { %469 = vmatpush.msra.mxu2 %v462_v25  ;;  %v67_v25 = vld [vmem:[%s1306_s0 + $0x118] sm:$0xff] }
  0x4e   :  { %470 = vmatpush.msra.mxu2 %v461_v27 }
  0x51   :  { %124 = vmatmul.f32.gmra.mxu0 %v38_v22 }
  0x59   :  { %127 = vmatmul.f32.gmra.mxu0 %v39_v23  ;;  %v57_v23 = vld [vmem:[%s1306_s0 + $0xc8] sm:$0xff] }
  0x61   :  { %130 = vmatmul.f32.gmra.mxu0 %v40_v24 }
  0x69   :  { %133 = vmatmul.f32.gmra.mxu0 %v41_v28  ;;  %v460_v28 = vld [vmem:[%s1309_s5 + $0x60] sm:$0xff] }
  0x6a   :  { %471 = vmatpush.msra.mxu2 %v460_v28 }
  0x6c   :  { %472 = vmatpush.msra.mxu2 %v459_v29 }
  0x71   :  { %136 = vmatmul.f32.gmra.mxu0 %v42_v33  ;;  %v458_v33 = vld [vmem:[%s1309_s5 + $0x50] sm:$0xff] }
  0x72   :  { %473 = vmatpush.msra.mxu2 %v458_v33 }
  0x74   :  { %474 = vmatpush.msra.mxu2 %v457_v35 }
  0x76   :  { %475 = vmatpush.msra.mxu2 %v456_v36 }
  0x78   :  { %476 = vmatpush.msra.mxu2 %v455_v37 }
  0x79   :  { %139 = vmatmul.f32.gmra.mxu0 %v43_v38 }
  0x7a   :  { %477 = vmatpush.msra.mxu2 %v454_v41 }
  0x7c   :  { %478 = vmatpush.msra.mxu2 %v453_v43 }
  0x7e   :  { %479 = vmatpush.msra.mxu2 %v452_v44 }
  0x81   :  { %142 = vmatmul.f32.gmra.mxu0 %v44_v42 }
  0x89   :  { %145 = vmatmul.f32.gmra.mxu0 %v45_v45  ;;  %v451_v45 = vld [vmem:[%s1309_s5 + $0x18] sm:$0xff] }
  0x8a   :  { %480 = vmatpush.msra.mxu2 %v451_v45 }
  0x91   :  { %148 = vmatmul.f32.gmra.mxu0 %v46_v46 }
  0x99   :  { %151 = vmatmul.f32.gmra.mxu0 %v47_v47  ;;  %v60_v47 = vld [vmem:[%s1306_s0 + $0xe0] sm:$0xff] }
  0x9e   :  { %v107_v49 = vpop.f32.mrf.mxu0 }
  0x9f   :  { %v108_v51 = vadd.f32 %v993_v48, %v107_v49 }
  0xa1   :  { %154 = vmatmul.f32.gmra.mxu0 %v48_v50  ;;  %v221_v52 = vmax.f32 %v108_v51, 0.0  ;;  %v450_v50 = vld [vmem:[%s1309_s5 + $0x10] sm:$0xff] }
  0xa2   :  { %481 = vmatpush.msra.mxu2 %v450_v50 }
  0xa3   :  { %295 = vmatmul.f32.vlgmr.msra.gmra.mxu1 %v221_v52  ;;  %v449_v52 = vld [vmem:[%s1309_s5 + $0x8] sm:$0xff] }
  0xa4   :  { %482 = vmatpush.msra.mxu2 %v449_v52 }
  0xa6   :  { %v110_v53 = vpop.f32.mrf.mxu0 }
  0xa7   :  { %v111_v55 = vadd.f32 %v993_v48, %v110_v53  ;;  %v448_v53 = vld [vmem:[%s1309_s5] sm:$0xff] }
  0xa8   :  { %483 = vmatpush.msra.mxu2 %v448_v53 }
  0xa9   :  { %157 = vmatmul.f32.gmra.mxu0 %v49_v54  ;;  %v222_v56 = vmax.f32 %v111_v55, 0.0  ;;  %v61_v55 = vld [vmem:[%s1306_s0 + $0xe8] sm:$0xff] }
  0xab   :  { %298 = vmatmul.f32.gmra.mxu1 %v222_v56 }
  0xae   :  { %v113_v57 = vpop.f32.mrf.mxu0 }
  0xaf   :  { %v114_v59 = vadd.f32 %v993_v48, %v113_v57 }
  0xb1   :  { %160 = vmatmul.f32.gmra.mxu0 %v50_v58  ;;  %v223_v60 = vmax.f32 %v114_v59, 0.0  ;;  %v62_v59 = vld [vmem:[%s1306_s0 + $0xf0] sm:$0xff] }
  0xb3   :  { %301 = vmatmul.f32.gmra.mxu1 %v223_v60 }
  0xb6   :  { %v116_v61 = vpop.f32.mrf.mxu0 }
  0xb7   :  { %v117_v63 = vadd.f32 %v993_v48, %v116_v61 }
  0xb9   :  { %163 = vmatmul.f32.gmra.mxu0 %v51_v62  ;;  %v224_v0 = vmax.f32 %v117_v63, 0.0  ;;  %v63_v63 = vld [vmem:[%s1306_s0 + $0xf8] sm:$0xff] }
  0xbb   :  { %304 = vmatmul.f32.gmra.mxu1 %v224_v0 }
  0xbe   :  { %v119_v1 = vpop.f32.mrf.mxu0 }
  0xbf   :  { %v120_v3 = vadd.f32 %v993_v48, %v119_v1 }
  0xc1   :  { %166 = vmatmul.f32.gmra.mxu0 %v52_v2  ;;  %v225_v4 = vmax.f32 %v120_v3, 0.0  ;;  %v1110_v2 = vld [vmem:[%s1308_s4] ss:$0 sm:$0xff] }
  0xc3   :  { %307 = vmatmul.f32.gmra.mxu1 %v225_v4  ;;  %v64_v4 = vld [vmem:[%s1306_s0 + $0x100] sm:$0xff] }
  0xc6   :  { %v122_v5 = vpop.f32.mrf.mxu0 }
  0xc7   :  { %v123_v7 = vadd.f32 %v993_v48, %v122_v5 }
  0xc9   :  { %169 = vmatmul.f32.gmra.mxu0 %v53_v6  ;;  %v226_v8 = vmax.f32 %v123_v7, 0.0 }
  0xcb   :  { %310 = vmatmul.f32.gmra.mxu1 %v226_v8 }
  0xce   :  { %v125_v9 = vpop.f32.mrf.mxu0 }
  0xcf   :  { %v126_v11 = vadd.f32 %v993_v48, %v125_v9 }
  0xd1   :  { %172 = vmatmul.f32.gmra.mxu0 %v54_v10  ;;  %v227_v12 = vmax.f32 %v126_v11, 0.0  ;;  %v65_v11 = vld [vmem:[%s1306_s0 + $0x108] sm:$0xff] }
  0xd3   :  { %313 = vmatmul.f32.gmra.mxu1 %v227_v12 }
  0xd6   :  { %v128_v13 = vpop.f32.mrf.mxu0 }
  0xd7   :  { %v129_v15 = vadd.f32 %v993_v48, %v128_v13 }
  0xd9   :  { %175 = vmatmul.f32.gmra.mxu0 %v55_v14  ;;  %v228_v16 = vmax.f32 %v129_v15, 0.0 }
  0xdb   :  { %316 = vmatmul.f32.gmra.mxu1 %v228_v16 }
  0xde   :  { %v131_v17 = vpop.f32.mrf.mxu0 }
  0xdf   :  { %v132_v19 = vadd.f32 %v993_v48, %v131_v17 }
  0xe1   :  { %178 = vmatmul.f32.gmra.mxu0 %v56_v18  ;;  %v229_v20 = vmax.f32 %v132_v19, 0.0  ;;  %v66_v18 = vld [vmem:[%s1306_s0 + $0x110] sm:$0xff] }
  0xe3   :  { %319 = vmatmul.f32.gmra.mxu1 %v229_v20 }
  0xe6   :  { %v134_v22 = vpop.f32.mrf.mxu0 }
  0xe7   :  { %v135_v24 = vadd.f32 %v993_v48, %v134_v22 }
  0xe9   :  { %181 = vmatmul.f32.gmra.mxu0 %v57_v23  ;;  %v230_v26 = vmax.f32 %v135_v24, 0.0 }
  0xeb   :  { %322 = vmatmul.f32.gmra.mxu1 %v230_v26 }
  0xee   :  { %v137_v30 = vpop.f32.mrf.mxu0 }
  0xef   :  { %v138_v32 = vadd.f32 %v993_v48, %v137_v30 }
  0xf1   :  { %184 = vmatmul.f32.gmra.mxu0 %v58_v31  ;;  %v231_v34 = vmax.f32 %v138_v32, 0.0  ;;  %v68_v32 = vld [vmem:[%s1306_s0 + $0x120] sm:$0xff] }
  0xf3   :  { %325 = vmatmul.f32.gmra.mxu1 %v231_v34 }
  0xf6   :  { %v140_v38 = vpop.f32.mrf.mxu0 }
  0xf7   :  { %v141_v40 = vadd.f32 %v993_v48, %v140_v38 }
  0xf9   :  { %187 = vmatmul.f32.gmra.mxu0 %v59_v39  ;;  %v232_v42 = vmax.f32 %v141_v40, 0.0  ;;  %v69_v39 = vld [vmem:[%s1306_s0 + $0x128] sm:$0xff] }
  0xfb   :  { %328 = vmatmul.f32.gmra.mxu1 %v232_v42 }
  0xfe   :  { %v143_v46 = vpop.f32.mrf.mxu0 }
  0xff   :  { %v144_v49 = vadd.f32 %v993_v48, %v143_v46 }
 0x101   :  { %190 = vmatmul.f32.gmra.mxu0 %v60_v47  ;;  %v233_v51 = vmax.f32 %v144_v49, 0.0 }
 0x103   :  { %331 = vmatmul.f32.gmra.mxu1 %v233_v51 }
 0x106   :  { %v146_v54 = vpop.f32.mrf.mxu0 }
 0x107   :  { %v147_v56 = vadd.f32 %v993_v48, %v146_v54 }
 0x109   :  { %193 = vmatmul.f32.gmra.mxu0 %v61_v55  ;;  %v234_v57 = vmax.f32 %v147_v56, 0.0 }
 0x10b   :  { %334 = vmatmul.f32.gmra.mxu1 %v234_v57 }
 0x10e   :  { %v149_v58 = vpop.f32.mrf.mxu0 }
 0x10f   :  { %v150_v60 = vadd.f32 %v993_v48, %v149_v58 }
 0x111   :  { %v235_v61 = vmax.f32 %v150_v60, 0.0  ;;  %196 = vmatmul.f32.gmra.mxu0 %v62_v59 }
 0x113   :  { %337 = vmatmul.f32.gmra.mxu1 %v235_v61 }
 0x116   :  { %v152_v62 = vpop.f32.mrf.mxu0 }
 0x117   :  { %v153_v0 = vadd.f32 %v993_v48, %v152_v62 }
 0x119   :  { %v236_v1 = vmax.f32 %v153_v0, 0.0  ;;  %199 = vmatmul.f32.gmra.mxu0 %v63_v63 }
 0x11b   :  { %340 = vmatmul.f32.gmra.mxu1 %v236_v1 }
 0x11e   :  { %v155_v3 = vpop.f32.mrf.mxu0 }
 0x11f   :  { %v156_v5 = vadd.f32 %v993_v48, %v155_v3 }
 0x120   :  { %v296_v6 = vpop.f32.mrf.mxu1 }
 0x121   :  { %v237_v7 = vmax.f32 %v156_v5, 0.0  ;;  %v297_v8 = vadd.f32 %v1110_v2, %v296_v6  ;;  %202 = vmatmul.f32.gmra.mxu0 %v64_v4 }
 0x123   :  { %343 = vmatmul.f32.gmra.mxu1 %v237_v7  ;;  %v410_v9 = vmax.f32 %v297_v8, 0.0 }
 0x125   :  { %484 = vmatmul.f32.vlgmr.msra.gmra.mxu2 %v410_v9 }
 0x126   :  { %v158_v10 = vpop.f32.mrf.mxu0 }
 0x127   :  { %v159_v12 = vadd.f32 %v993_v48, %v158_v10 }
 0x128   :  { %v299_v13 = vpop.f32.mrf.mxu1 }
 0x129   :  { %v238_v14 = vmax.f32 %v159_v12, 0.0  ;;  %v300_v15 = vadd.f32 %v1110_v2, %v299_v13  ;;  %205 = vmatmul.f32.gmra.mxu0 %v65_v11 }
 0x12b   :  { %346 = vmatmul.f32.gmra.mxu1 %v238_v14  ;;  %v411_v16 = vmax.f32 %v300_v15, 0.0 }
 0x12d   :  { %487 = vmatmul.f32.gmra.mxu2 %v411_v16 }
 0x12e   :  { %v161_v17 = vpop.f32.mrf.mxu0 }
 0x12f   :  { %v162_v19 = vadd.f32 %v993_v48, %v161_v17 }
 0x130   :  { %v302_v20 = vpop.f32.mrf.mxu1 }
 0x131   :  { %v239_v21 = vmax.f32 %v162_v19, 0.0  ;;  %v303_v22 = vadd.f32 %v1110_v2, %v302_v20  ;;  %208 = vmatmul.f32.gmra.mxu0 %v66_v18 }
 0x133   :  { %349 = vmatmul.f32.gmra.mxu1 %v239_v21  ;;  %v412_v23 = vmax.f32 %v303_v22, 0.0 }
 0x135   :  { %490 = vmatmul.f32.gmra.mxu2 %v412_v23 }
 0x136   :  { %v164_v24 = vpop.f32.mrf.mxu0 }
 0x137   :  { %v165_v26 = vadd.f32 %v993_v48, %v164_v24 }
 0x138   :  { %v305_v27 = vpop.f32.mrf.mxu1 }
 0x139   :  { %v240_v28 = vmax.f32 %v165_v26, 0.0  ;;  %v306_v29 = vadd.f32 %v1110_v2, %v305_v27  ;;  %211 = vmatmul.f32.gmra.mxu0 %v67_v25 }
 0x13b   :  { %352 = vmatmul.f32.gmra.mxu1 %v240_v28  ;;  %v413_v30 = vmax.f32 %v306_v29, 0.0 }
 0x13d   :  { %493 = vmatmul.f32.gmra.mxu2 %v413_v30 }
 0x13e   :  { %v167_v31 = vpop.f32.mrf.mxu0 }
 0x13f   :  { %v168_v33 = vadd.f32 %v993_v48, %v167_v31 }
 0x140   :  { %v308_v34 = vpop.f32.mrf.mxu1 }
 0x141   :  { %v241_v35 = vmax.f32 %v168_v33, 0.0  ;;  %v309_v36 = vadd.f32 %v1110_v2, %v308_v34  ;;  %214 = vmatmul.f32.gmra.mxu0 %v68_v32 }
 0x143   :  { %355 = vmatmul.f32.gmra.mxu1 %v241_v35  ;;  %v414_v37 = vmax.f32 %v309_v36, 0.0 }
 0x145   :  { %496 = vmatmul.f32.gmra.mxu2 %v414_v37 }
 0x146   :  { %v170_v38 = vpop.f32.mrf.mxu0 }
 0x147   :  { %v171_v40 = vadd.f32 %v993_v48, %v170_v38 }
 0x148   :  { %v311_v41 = vpop.f32.mrf.mxu1 }
 0x149   :  { %v242_v42 = vmax.f32 %v171_v40, 0.0  ;;  %v312_v43 = vadd.f32 %v1110_v2, %v311_v41  ;;  %217 = vmatmul.f32.gmra.mxu0 %v69_v39 }
 0x14b   :  { %358 = vmatmul.f32.gmra.mxu1 %v242_v42  ;;  %v415_v44 = vmax.f32 %v312_v43, 0.0 }
 0x14d   :  { %499 = vmatmul.f32.gmra.mxu2 %v415_v44 }
 0x14e   :  { %v173_v45 = vpop.f32.mrf.mxu0 }
 0x14f   :  { %v174_v46 = vadd.f32 %v993_v48, %v173_v45 }
 0x150   :  { %v314_v47 = vpop.f32.mrf.mxu1 }
 0x151   :  { %v243_v49 = vmax.f32 %v174_v46, 0.0  ;;  %v315_v50 = vadd.f32 %v1110_v2, %v314_v47 }
 0x153   :  { %361 = vmatmul.f32.gmra.mxu1 %v243_v49  ;;  %v416_v51 = vmax.f32 %v315_v50, 0.0 }
 0x155   :  { %502 = vmatmul.f32.gmra.mxu2 %v416_v51 }
 0x156   :  { %v176_v52 = vpop.f32.mrf.mxu0 }
 0x157   :  { %v177_v53 = vadd.f32 %v993_v48, %v176_v52 }
 0x158   :  { %v317_v54 = vpop.f32.mrf.mxu1 }
 0x159   :  { %v244_v55 = vmax.f32 %v177_v53, 0.0  ;;  %v318_v56 = vadd.f32 %v1110_v2, %v317_v54 }
 0x15b   :  { %364 = vmatmul.f32.gmra.mxu1 %v244_v55  ;;  %v417_v57 = vmax.f32 %v318_v56, 0.0 }
 0x15d   :  { %505 = vmatmul.f32.gmra.mxu2 %v417_v57 }
 0x15e   :  { %v179_v58 = vpop.f32.mrf.mxu0 }
 0x15f   :  { %v180_v59 = vadd.f32 %v993_v48, %v179_v58 }
 0x160   :  { %v320_v60 = vpop.f32.mrf.mxu1 }
 0x161   :  { %v245_v61 = vmax.f32 %v180_v59, 0.0  ;;  %v321_v62 = vadd.f32 %v1110_v2, %v320_v60 }
 0x163   :  { %367 = vmatmul.f32.gmra.mxu1 %v245_v61  ;;  %v418_v63 = vmax.f32 %v321_v62, 0.0 }
 0x165   :  { %508 = vmatmul.f32.gmra.mxu2 %v418_v63 }
 0x166   :  { %v182_v0 = vpop.f32.mrf.mxu0 }
 0x167   :  { %v183_v1 = vadd.f32 %v993_v48, %v182_v0 }
 0x168   :  { %v323_v3 = vpop.f32.mrf.mxu1 }
 0x169   :  { %v246_v4 = vmax.f32 %v183_v1, 0.0  ;;  %v324_v5 = vadd.f32 %v1110_v2, %v323_v3 }
 0x16b   :  { %370 = vmatmul.f32.gmra.mxu1 %v246_v4  ;;  %v419_v6 = vmax.f32 %v324_v5, 0.0 }
 0x16d   :  { %511 = vmatmul.f32.gmra.mxu2 %v419_v6 }
 0x16e   :  { %v185_v7 = vpop.f32.mrf.mxu0 }
 0x16f   :  { %v186_v8 = vadd.f32 %v993_v48, %v185_v7 }
 0x170   :  { %v326_v9 = vpop.f32.mrf.mxu1 }
 0x171   :  { %v247_v10 = vmax.f32 %v186_v8, 0.0  ;;  %v327_v11 = vadd.f32 %v1110_v2, %v326_v9 }
 0x173   :  { %373 = vmatmul.f32.gmra.mxu1 %v247_v10  ;;  %v420_v12 = vmax.f32 %v327_v11, 0.0 }
 0x175   :  { %514 = vmatmul.f32.gmra.mxu2 %v420_v12 }
 0x176   :  { %v188_v13 = vpop.f32.mrf.mxu0 }
 0x177   :  { %v189_v14 = vadd.f32 %v993_v48, %v188_v13 }
 0x178   :  { %v329_v15 = vpop.f32.mrf.mxu1 }
 0x179   :  { %v248_v16 = vmax.f32 %v189_v14, 0.0  ;;  %v330_v17 = vadd.f32 %v1110_v2, %v329_v15 }
 0x17b   :  { %376 = vmatmul.f32.gmra.mxu1 %v248_v16  ;;  %v421_v18 = vmax.f32 %v330_v17, 0.0 }
 0x17d   :  { %517 = vmatmul.f32.gmra.mxu2 %v421_v18 }
 0x17e   :  { %v191_v19 = vpop.f32.mrf.mxu0 }
 0x17f   :  { %v192_v20 = vadd.f32 %v993_v48, %v191_v19 }
 0x180   :  { %v332_v21 = vpop.f32.mrf.mxu1 }
 0x181   :  { %v249_v22 = vmax.f32 %v192_v20, 0.0  ;;  %v333_v23 = vadd.f32 %v1110_v2, %v332_v21 }
 0x183   :  { %379 = vmatmul.f32.gmra.mxu1 %v249_v22  ;;  %v422_v24 = vmax.f32 %v333_v23, 0.0 }
 0x185   :  { %520 = vmatmul.f32.gmra.mxu2 %v422_v24 }
 0x186   :  { %v194_v25 = vpop.f32.mrf.mxu0 }
 0x187   :  { %v195_v26 = vadd.f32 %v993_v48, %v194_v25 }
 0x188   :  { %v335_v27 = vpop.f32.mrf.mxu1 }
 0x189   :  { %v250_v28 = vmax.f32 %v195_v26, 0.0  ;;  %v336_v29 = vadd.f32 %v1110_v2, %v335_v27 }
 0x18b   :  { %382 = vmatmul.f32.gmra.mxu1 %v250_v28  ;;  %v423_v30 = vmax.f32 %v336_v29, 0.0 }
 0x18d   :  { %523 = vmatmul.f32.gmra.mxu2 %v423_v30 }
 0x18e   :  { %v197_v31 = vpop.f32.mrf.mxu0 }
 0x18f   :  { %v198_v32 = vadd.f32 %v993_v48, %v197_v31 }
 0x190   :  { %v338_v33 = vpop.f32.mrf.mxu1 }
 0x191   :  { %v251_v34 = vmax.f32 %v198_v32, 0.0  ;;  %v339_v35 = vadd.f32 %v1110_v2, %v338_v33 }
 0x193   :  { %v424_v36 = vmax.f32 %v339_v35, 0.0  ;;  %385 = vmatmul.f32.gmra.mxu1 %v251_v34 }
 0x195   :  { %526 = vmatmul.f32.gmra.mxu2 %v424_v36 }
 0x196   :  { %v200_v37 = vpop.f32.mrf.mxu0 }
 0x197   :  { %v201_v38 = vadd.f32 %v993_v48, %v200_v37 }
 0x198   :  { %v341_v39 = vpop.f32.mrf.mxu1 }
 0x199   :  { %v252_v40 = vmax.f32 %v201_v38, 0.0  ;;  %v342_v41 = vadd.f32 %v1110_v2, %v341_v39 }
 0x19b   :  { %v425_v42 = vmax.f32 %v342_v41, 0.0  ;;  %388 = vmatmul.f32.gmra.mxu1 %v252_v40 }
 0x19d   :  { %529 = vmatmul.f32.gmra.mxu2 %v425_v42 }
 0x19e   :  { %v203_v43 = vpop.f32.mrf.mxu0 }
 0x19f   :  { %v204_v44 = vadd.f32 %v993_v48, %v203_v43 }
 0x1a0   :  { %v344_v45 = vpop.f32.mrf.mxu1 }
 0x1a1   :  { %v345_v46 = vadd.f32 %v1110_v2, %v344_v45  ;;  %v253_v47 = vmax.f32 %v204_v44, 0.0 }
 0x1a3   :  { %v426_v49 = vmax.f32 %v345_v46, 0.0  ;;  %391 = vmatmul.f32.gmra.mxu1 %v253_v47 }
 0x1a5   :  { %532 = vmatmul.f32.gmra.mxu2 %v426_v49 }
 0x1a6   :  { %v206_v50 = vpop.f32.mrf.mxu0 }
 0x1a7   :  { %v207_v51 = vadd.f32 %v993_v48, %v206_v50 }
 0x1a8   :  { %v347_v52 = vpop.f32.mrf.mxu1  ;;  %v1165_v53 = vpop.f32.mrf.mxu2 }
 0x1a9   :  { %v348_v54 = vadd.f32 %v1110_v2, %v347_v52  ;;  %v254_v55 = vmax.f32 %v207_v51, 0.0 }
 0x1ab   :  { %v427_v56 = vmax.f32 %v348_v54, 0.0  ;;  %394 = vmatmul.f32.gmra.mxu1 %v254_v55 }
 0x1ad   :  { %535 = vmatmul.f32.gmra.mxu2 %v427_v56 }
 0x1ae   :  { %v209_v57 = vpop.f32.mrf.mxu0 }
 0x1af   :  { %v210_v58 = vadd.f32 %v993_v48, %v209_v57 }
 0x1b0   :  { %v350_v59 = vpop.f32.mrf.mxu1  ;;  %v1169_v60 = vpop.f32.mrf.mxu2 }
 0x1b1   :  { %v351_v61 = vadd.f32 %v1110_v2, %v350_v59  ;;  %v255_v62 = vmax.f32 %v210_v58, 0.0 }
 0x1b3   :  { %v428_v63 = vmax.f32 %v351_v61, 0.0  ;;  %397 = vmatmul.f32.gmra.mxu1 %v255_v62 }
 0x1b5   :  { %538 = vmatmul.f32.gmra.mxu2 %v428_v63 }
 0x1b6   :  { %v212_v0 = vpop.f32.mrf.mxu0 }
 0x1b7   :  { %v213_v1 = vadd.f32 %v993_v48, %v212_v0  ;;  %v1205_v0 = vld [vmem:[%s1310_s6] ss:$0 sm:$0xff] }
 0x1b8   :  { %v353_v3 = vpop.f32.mrf.mxu1  ;;  %v1173_v4 = vpop.f32.mrf.mxu2 }
 0x1b9   :  { %v354_v5 = vadd.f32 %v1110_v2, %v353_v3  ;;  %v256_v6 = vmax.f32 %v213_v1, 0.0 }
 0x1bb   :  { %v429_v7 = vmax.f32 %v354_v5, 0.0  ;;  %400 = vmatmul.f32.gmra.mxu1 %v256_v6 }
 0x1bd   :  { %541 = vmatmul.f32.gmra.mxu2 %v429_v7 }
 0x1be   :  { %v215_v8 = vpop.f32.mrf.mxu0 }
 0x1bf   :  { %v216_v9 = vadd.f32 %v993_v48, %v215_v8 }
 0x1c0   :  { %v356_v10 = vpop.f32.mrf.mxu1  ;;  %v1177_v11 = vpop.f32.mrf.mxu2 }
 0x1c1   :  { %v357_v12 = vadd.f32 %v1110_v2, %v356_v10  ;;  %v257_v13 = vmax.f32 %v216_v9, 0.0 }
 0x1c3   :  { %v430_v14 = vmax.f32 %v357_v12, 0.0  ;;  %403 = vmatmul.f32.gmra.mxu1 %v257_v13 }
 0x1c5   :  { %544 = vmatmul.f32.gmra.mxu2 %v430_v14 }
 0x1c6   :  { %v218_v15 = vpop.f32.mrf.mxu0 }
 0x1c7   :  { %v219_v16 = vadd.f32 %v993_v48, %v218_v15 }
 0x1c8   :  { %v359_v17 = vpop.f32.mrf.mxu1  ;;  %v1181_v18 = vpop.f32.mrf.mxu2 }
 0x1c9   :  { %v360_v19 = vadd.f32 %v1110_v2, %v359_v17  ;;  %v258_v20 = vmax.f32 %v219_v16, 0.0 }
 0x1cb   :  { %v431_v21 = vmax.f32 %v360_v19, 0.0  ;;  %406 = vmatmul.f32.gmra.mxu1 %v258_v20 }
 0x1cd   :  { %547 = vmatmul.f32.gmra.mxu2 %v431_v21 }
 0x1d0   :  { %v362_v22 = vpop.f32.mrf.mxu1  ;;  %v1184_v23 = vpop.f32.mrf.mxu2 }
 0x1d1   :  { %v363_v24 = vadd.f32 %v1110_v2, %v362_v22 }
 0x1d3   :  { %v432_v25 = vmax.f32 %v363_v24, 0.0 }
 0x1d5   :  { %550 = vmatmul.f32.gmra.mxu2 %v432_v25 }
 0x1d8   :  { %v365_v26 = vpop.f32.mrf.mxu1  ;;  %v1187_v27 = vpop.f32.mrf.mxu2 }
 0x1d9   :  { %v366_v48 = vadd.f32 %v1110_v2, %v365_v26 }
 0x1db   :  { %v433_v28 = vmax.f32 %v366_v48, 0.0 }
 0x1dd   :  { %553 = vmatmul.f32.gmra.mxu2 %v433_v28 }
 0x1e0   :  { %v368_v29 = vpop.f32.mrf.mxu1  ;;  %v1190_v30 = vpop.f32.mrf.mxu2 }
 0x1e1   :  { %v369_v31 = vadd.f32 %v1110_v2, %v368_v29 }
 0x1e3   :  { %v434_v32 = vmax.f32 %v369_v31, 0.0 }
 0x1e5   :  { %556 = vmatmul.f32.gmra.mxu2 %v434_v32 }
 0x1e8   :  { %v371_v33 = vpop.f32.mrf.mxu1  ;;  %v1193_v34 = vpop.f32.mrf.mxu2 }
 0x1e9   :  { %v372_v35 = vadd.f32 %v1110_v2, %v371_v33 }
 0x1eb   :  { %v435_v36 = vmax.f32 %v372_v35, 0.0 }
 0x1ed   :  { %559 = vmatmul.f32.gmra.mxu2 %v435_v36  ;;  %v510_v36 = vadd.f32 %v1205_v0, %v1193_v34  ;;  %v501_v34 = vadd.f32 %v1205_v0, %v1184_v23  ;;  %v492_v23 = vadd.f32 %v1205_v0, %v1173_v4 }
 0x1f0   :  { %v374_v37 = vpop.f32.mrf.mxu1  ;;  %v512_v38 = vpop.f32.mrf.mxu2 }
 0x1f1   :  { %v375_v39 = vadd.f32 %v1110_v2, %v374_v37  ;;  %v513_v29 = vadd.f32 %v1205_v0, %v512_v38 }
 0x1f3   :  { %v436_v40 = vmax.f32 %v375_v39, 0.0  ;;  %v608_v37 = vmax.f32 %v513_v29, 0.0 }
 0x1f5   :  { %562 = vmatmul.f32.gmra.mxu2 %v436_v40  ;;  %v507_v40 = vadd.f32 %v1205_v0, %v1190_v30 }
 0x1f8   :  { %v377_v41 = vpop.f32.mrf.mxu1  ;;  %v515_v42 = vpop.f32.mrf.mxu2 }
 0x1f9   :  { %v378_v43 = vadd.f32 %v1110_v2, %v377_v41  ;;  %v516_v26 = vadd.f32 %v1205_v0, %v515_v42  ;;  %v607_v41 = vmax.f32 %v510_v36, 0.0 }
 0x1fb   :  { %v437_v44 = vmax.f32 %v378_v43, 0.0  ;;  %v609_v31 = vmax.f32 %v516_v26, 0.0 }
 0x1fd   :  { %565 = vmatmul.f32.gmra.mxu2 %v437_v44  ;;  %v504_v44 = vadd.f32 %v1205_v0, %v1187_v27  ;;  %v495_v27 = vadd.f32 %v1205_v0, %v1177_v11 }
 0x200   :  { %v380_v45 = vpop.f32.mrf.mxu1  ;;  %v518_v46 = vpop.f32.mrf.mxu2 }
 0x201   :  { %v381_v47 = vadd.f32 %v1110_v2, %v380_v45  ;;  %v519_v20 = vadd.f32 %v1205_v0, %v518_v46  ;;  %v606_v45 = vmax.f32 %v507_v40, 0.0  ;;  %v638_v40 = vld [vmem:[%s1312_s8] sm:$0xff] }
 0x203   :  { %v438_v49 = vmax.f32 %v381_v47, 0.0  ;;  %v610_v48 = vmax.f32 %v519_v20, 0.0  ;;  %v605_v47 = vmax.f32 %v504_v44, 0.0 }
 0x205   :  { %568 = vmatmul.f32.gmra.mxu2 %v438_v49 }
 0x208   :  { %v383_v50 = vpop.f32.mrf.mxu1  ;;  %v521_v51 = vpop.f32.mrf.mxu2 }
 0x209   :  { %v384_v52 = vadd.f32 %v1110_v2, %v383_v50  ;;  %v522_v16 = vadd.f32 %v1205_v0, %v521_v51  ;;  %v498_v51 = vadd.f32 %v1205_v0, %v1181_v18  ;;  %v601_v18 = vmax.f32 %v492_v23, 0.0 }
 0x20b   :  { %v439_v54 = vmax.f32 %v384_v52, 0.0  ;;  %v611_v21 = vmax.f32 %v522_v16, 0.0  ;;  %v604_v52 = vmax.f32 %v501_v34, 0.0 }
 0x20d   :  { %571 = vmatmul.f32.gmra.mxu2 %v439_v54 }
 0x210   :  { %v386_v55 = vpop.f32.mrf.mxu1  ;;  %v524_v56 = vpop.f32.mrf.mxu2 }
 0x211   :  { %v387_v57 = vadd.f32 %v1110_v2, %v386_v55  ;;  %v525_v10 = vadd.f32 %v1205_v0, %v524_v56  ;;  %v603_v55 = vmax.f32 %v498_v51, 0.0 }
 0x213   :  { %v440_v58 = vmax.f32 %v387_v57, 0.0  ;;  %v612_v17 = vmax.f32 %v525_v10, 0.0  ;;  %v602_v57 = vmax.f32 %v495_v27, 0.0 }
 0x215   :  { %574 = vmatmul.f32.gmra.mxu2 %v440_v58 }
 0x218   :  { %v389_v59 = vpop.f32.mrf.mxu1  ;;  %v527_v61 = vpop.f32.mrf.mxu2 }
 0x219   :  { %v390_v62 = vadd.f32 %v1110_v2, %v389_v59  ;;  %v528_v7 = vadd.f32 %v1205_v0, %v527_v61  ;;  %v486_v59 = vadd.f32 %v1205_v0, %v1165_v53 }
 0x21b   :  { %v441_v63 = vmax.f32 %v390_v62, 0.0  ;;  %v613_v12 = vmax.f32 %v528_v7, 0.0  ;;  %v599_v11 = vmax.f32 %v486_v59, 0.0 }
 0x21d   :  { %577 = vmatmul.f32.gmra.mxu2 %v441_v63 }
 0x220   :  { %v530_v1 = vpop.f32.mrf.mxu2  ;;  %v392_v3 = vpop.f32.mrf.mxu1 }
 0x221   :  { %v531_v5 = vadd.f32 %v1205_v0, %v530_v1  ;;  %v393_v6 = vadd.f32 %v1110_v2, %v392_v3 }
 0x223   :  { %v614_v8 = vmax.f32 %v531_v5, 0.0  ;;  %v442_v9 = vmax.f32 %v393_v6, 0.0 }
 0x225   :  { %644 = vmatpush.xpose.msra.mxu3 %v614_v8  ;;  %580 = vmatmul.f32.gmra.mxu2 %v442_v9 }
 0x228   :  { %v1211_v13 = vpop.f32.mrf.mxu2  ;;  %v395_v14 = vpop.f32.mrf.mxu1 }
 0x229   :  { %645 = vmatpush.xpose.msra.mxu3 %v613_v12  ;;  %v396_v15 = vadd.f32 %v1110_v2, %v395_v14  ;;  %v534_v27 = vadd.f32 %v1205_v0, %v1211_v13 }
 0x22b   :  { %v443_v19 = vmax.f32 %v396_v15, 0.0 }
 0x22d   :  { %646 = vmatpush.xpose.msra.mxu3 %v612_v17  ;;  %583 = vmatmul.f32.gmra.mxu2 %v443_v19 }
 0x230   :  { %v1216_v22 = vpop.f32.mrf.mxu2  ;;  %v398_v24 = vpop.f32.mrf.mxu1 }
 0x231   :  { %647 = vmatpush.xpose.msra.mxu3 %v611_v21  ;;  %v399_v25 = vadd.f32 %v1110_v2, %v398_v24  ;;  %v1260_v21 = vld [vmem:[%s1311_s7] sm:$0xff]  ;;  %v537_v51 = vadd.f32 %v1205_v0, %v1216_v22 }
 0x233   :  { %v444_v28 = vmax.f32 %v399_v25, 0.0 }
 0x235   :  { %648 = vmatpush.xpose.msra.mxu3 %v610_v48  ;;  %586 = vmatmul.f32.gmra.mxu2 %v444_v28 }
 0x238   :  { %v1221_v32 = vpop.f32.mrf.mxu2  ;;  %v401_v33 = vpop.f32.mrf.mxu1 }
 0x239   :  { %649 = vmatpush.xpose.msra.mxu3 %v609_v31  ;;  %v402_v35 = vadd.f32 %v1110_v2, %v401_v33 }
 0x23b   :  { %v445_v39 = vmax.f32 %v402_v35, 0.0 }
 0x23d   :  { %650 = vmatpush.xpose.msra.mxu3 %v608_v37  ;;  %589 = vmatmul.f32.gmra.mxu2 %v445_v39 }
 0x240   :  { %v1228_v42 = vpop.f32.mrf.mxu2  ;;  %v404_v38 = vpop.f32.mrf.mxu1 }
 0x241   :  { %651 = vmatpush.xpose.msra.mxu3 %v607_v41  ;;  %v405_v43 = vadd.f32 %v1110_v2, %v404_v38  ;;  %v795_v41 = vmov 0   ;;  %v543_v34 = vadd.f32 %v1205_v0, %v1228_v42 }
 0x242   :  { %779 = vset.pattern.permute.xlu0 %v795_v41 }
 0x243   :  { %v446_v46 = vmax.f32 %v405_v43, 0.0  ;;  %641 = vperm.xlu0 %779, %v638_v40  }
 0x245   :  { %652 = vmatpush.xpose.msra.mxu3 %v606_v45  ;;  %592 = vmatmul.f32.gmra.mxu2 %v446_v46 }
 0x248   :  { %v1235_v49 = vpop.f32.mrf.mxu2  ;;  %v407_v30 = vpop.f32.mrf.mxu1 }
 0x249   :  { %653 = vmatpush.xpose.msra.mxu3 %v605_v47  ;;  %v408_v50 = vadd.f32 %v1110_v2, %v407_v30  ;;  %v489_v2 = vadd.f32 %v1205_v0, %v1169_v60  ;;  %v546_v44 = vadd.f32 %v1205_v0, %v1235_v49  ;;  %v540_v30 = vadd.f32 %v1205_v0, %v1221_v32 }
 0x24b   :  { %v447_v54 = vmax.f32 %v408_v50, 0.0  ;;  %v600_v61 = vmax.f32 %v489_v2, 0.0  ;;  %v619_v47 = vmax.f32 %v546_v44, 0.0  ;;  %v618_v50 = vmax.f32 %v543_v34, 0.0 }
 0x24d   :  { %654 = vmatpush.xpose.msra.mxu3 %v604_v52  ;;  %595 = vmatmul.f32.gmra.mxu2 %v447_v54  ;;  %v617_v52 = vmax.f32 %v540_v30, 0.0 }
 0x250   :  { %v1242_v56 = vpop.f32.mrf.mxu2 }
 0x251   :  { %655 = vmatpush.xpose.msra.mxu3 %v603_v55  ;;  %v549_v38 = vadd.f32 %v1205_v0, %v1242_v56  ;;  %v616_v55 = vmax.f32 %v537_v51, 0.0  ;;  %v615_v56 = vmax.f32 %v534_v27, 0.0 }
 0x253   :  { %v620_v45 = vmax.f32 %v549_v38, 0.0 }
 0x255   :  { %656 = vmatpush.xpose.msra.mxu3 %v602_v57 }
 0x258   :  { %v551_v58 = vpop.f32.mrf.mxu2 }
 0x259   :  { %657 = vmatpush.xpose.msra.mxu3 %v601_v18  ;;  %v552_v36 = vadd.f32 %v1205_v0, %v551_v58 }
 0x25b   :  { %v621_v43 = vmax.f32 %v552_v36, 0.0 }
 0x25d   :  { %658 = vmatpush.xpose.msra.mxu3 %v600_v61 }
 0x260   :  { %v554_v62 = vpop.f32.mrf.mxu2 }
 0x261   :  { %659 = vmatpush.xpose.msra.mxu3 %v599_v11  ;;  %v555_v33 = vadd.f32 %v1205_v0, %v554_v62 }
 0x263   :  { %v622_v37 = vmax.f32 %v555_v33, 0.0 }
 0x264   :  { %660 = vmatmul.f32.vlgmr.msra.gmra.mxu3 %v1260_v21 }
 0x268   :  { %v557_v63 = vpop.f32.mrf.mxu2 }
 0x269   :  { %v558_v29 = vadd.f32 %v1205_v0, %v557_v63 }
 0x26b   :  { %v623_v35 = vmax.f32 %v558_v29, 0.0 }
 0x270   :  { %v560_v1 = vpop.f32.mrf.mxu2 }
 0x271   :  { %v561_v26 = vadd.f32 %v1205_v0, %v560_v1 }
 0x273   :  { %v624_v31 = vmax.f32 %v561_v26, 0.0 }
 0x278   :  { %v563_v3 = vpop.f32.mrf.mxu2 }
 0x279   :  { %v564_v24 = vadd.f32 %v1205_v0, %v563_v3 }
 0x27b   :  { %v625_v48 = vmax.f32 %v564_v24, 0.0 }
 0x280   :  { %v566_v4 = vpop.f32.mrf.mxu2 }
 0x281   :  { %v567_v17 = vadd.f32 %v1205_v0, %v566_v4 }
 0x283   :  { %v626_v25 = vmax.f32 %v567_v17, 0.0 }
 0x288   :  { %v569_v5 = vpop.f32.mrf.mxu2 }
 0x289   :  { %v570_v15 = vadd.f32 %v1205_v0, %v569_v5 }
 0x28b   :  { %v627_v19 = vmax.f32 %v570_v15, 0.0 }
 0x290   :  { %v572_v6 = vpop.f32.mrf.mxu2 }
 0x291   :  { %v573_v53 = vadd.f32 %v1205_v0, %v572_v6  ;;  %v761_v6 = vlaneseq }
 0x293   :  { %v628_v16 = vmax.f32 %v573_v53, 0.0 }
 0x298   :  { %v575_v7 = vpop.f32.mrf.mxu2 }
 0x299   :  { %v576_v9 = vadd.f32 %v1205_v0, %v575_v7 }
 0x29b   :  { %v629_v12 = vmax.f32 %v576_v9, 0.0  ;;  %v762_v9 = vshrl.u32 %v761_v6, 7 }
 0x29d   :  { %vm763_vm4 = vcmp.eq.s32.totalorder %v762_v9, 0 }
 0x2a0   :  { %v578_v8 = vpop.f32.mrf.mxu2 }
 0x2a1   :  { %v579_v60 = vadd.f32 %v1205_v0, %v578_v8 }
 0x2a3   :  { %v630_v10 = vmax.f32 %v579_v60, 0.0 }
 0x2a5   :  { %664 = vmatpush.xpose.msrb.mxu3 %v630_v10 }
 0x2a8   :  { %v1253_v14 = vpop.f32.mrf.mxu2 }
 0x2a9   :  { %665 = vmatpush.xpose.msrb.mxu3 %v629_v12  ;;  %v582_v58 = vadd.f32 %v1205_v0, %v1253_v14 }
 0x2ab   :  { %v631_v61 = vmax.f32 %v582_v58, 0.0 }
 0x2ad   :  { %666 = vmatpush.xpose.msrb.mxu3 %v628_v16 }
 0x2b0   :  { %v584_v20 = vpop.f32.mrf.mxu2 }
 0x2b1   :  { %667 = vmatpush.xpose.msrb.mxu3 %v627_v19  ;;  %v585_v13 = vadd.f32 %v1205_v0, %v584_v20 }
 0x2b3   :  { %v632_v59 = vmax.f32 %v585_v13, 0.0 }
 0x2b5   :  { %668 = vmatpush.xpose.msrb.mxu3 %v626_v25  ;;  %v642_v62 = vpop.permute.xlu0 %641 }
 0x2b8   :  { %v587_v28 = vpop.f32.mrf.mxu2 }
 0x2b9   :  { %669 = vmatpush.xpose.msrb.mxu3 %v625_v48  ;;  %v588_v22 = vadd.f32 %v1205_v0, %v587_v28 }
 0x2bb   :  { %v633_v18 = vmax.f32 %v588_v22, 0.0 }
 0x2bd   :  { %670 = vmatpush.xpose.msrb.mxu3 %v624_v31 }
 0x2c0   :  { %v590_v39 = vpop.f32.mrf.mxu2 }
 0x2c1   :  { %671 = vmatpush.xpose.msrb.mxu3 %v623_v35  ;;  %v591_v32 = vadd.f32 %v1205_v0, %v590_v39 }
 0x2c3   :  { %v634_v2 = vmax.f32 %v591_v32, 0.0 }
 0x2c5   :  { %672 = vmatpush.xpose.msrb.mxu3 %v622_v37 }
 0x2c8   :  { %v593_v46 = vpop.f32.mrf.mxu2 }
 0x2c9   :  { %673 = vmatpush.xpose.msrb.mxu3 %v621_v43  ;;  %v594_v23 = vadd.f32 %v1205_v0, %v593_v46 }
 0x2cb   :  { %v635_v57 = vmax.f32 %v594_v23, 0.0 }
 0x2cd   :  { %674 = vmatpush.xpose.msrb.mxu3 %v620_v45 }
 0x2d0   :  { %v596_v54 = vpop.f32.mrf.mxu2 }
 0x2d1   :  { %675 = vmatpush.xpose.msrb.mxu3 %v619_v47  ;;  %v597_v49 = vadd.f32 %v1205_v0, %v596_v54 }
 0x2d3   :  { %v636_v42 = vmax.f32 %v597_v49, 0.0 }
 0x2d5   :  { %676 = vmatpush.xpose.msrb.mxu3 %v618_v50 }
 0x2d9   :  { %677 = vmatpush.xpose.msrb.mxu3 %v617_v52 }
 0x2dd   :  { %678 = vmatpush.xpose.msrb.mxu3 %v616_v55 }
 0x2e1   :  { %679 = vmatpush.xpose.msrb.mxu3 %v615_v56 }
 0x2e4   :  { %680 = vmatmul.f32.vlgmr.msrb.gmra.mxu3 %v1260_v21 }
 0x2e5   :  { %694 = vmatpush.xpose.msra.mxu3 %v636_v42 }
 0x2e7   :  { %v661_v11 = vpop.f32.mrf.mxu3 }
 0x2e8   :  { %v662_v63 = vadd.f32 %v661_v11, %v642_v62 }
 0x2e9   :  { %695 = vmatpush.xpose.msra.mxu3 %v635_v57 }
 0x2ea   :  { %v775_v1 = vmul.f32 -1.442695, %v662_v63 }
 0x2ec   :  { %783 = vpow2.f32 %v775_v1 }
 0x2ed   :  { %696 = vmatpush.xpose.msra.mxu3 %v634_v2 }
 0x2f1   :  { %697 = vmatpush.xpose.msra.mxu3 %v633_v18 }
 0x2f2   :  { %v784_v3 = vpop.eup %783 }
 0x2f3   :  { %v713_v4 = vadd.f32 1.0, %v784_v3 }
 0x2f5   :  { %698 = vmatpush.xpose.msra.mxu3 %v632_v59  ;;  %785 = vrcp.f32 %v713_v4  ;;  %v727_v8 = vand.u32 2147483648, %v713_v4  ;;  %vm721_vm0 = vweird.f32 %v713_v4  ;;  %v725_v0 = vand.u32 2147483647, %v713_v4 }
 0x2f7   :  { %v728_v53 = vor.u32 1.1754944e-38, %v727_v8  ;;  %vm726_vm3 = vcmp.eq.f32.partialorder %v725_v0, 8.507059e+37 }
 0x2f9   :  { %699 = vmatpush.xpose.msra.mxu3 %v631_v61 }
 0x2fb   :  { %v786_v5 = vpop.eup %785 }
 0x2fc   :  { %700 = vmatmul.f32.vlgmr.msra.gmra.mxu3 %v1260_v21  ;;  %v717_v7 = vmul.f32 %v786_v5, %v713_v4  ;;  %vm722_vm1 = vweird.f32 %v786_v5 }
 0x2fd   :  { %vm723_vm2 = vmor %vm721_vm0, %vm722_vm1 }
 0x2fe   :  { %v718_v60 = vsub.f32 1.0, %v717_v7 }
 0x300   :  { %v719_v10 = vmul.f32 %v786_v5, %v718_v60 }
 0x302   :  { %v720_v12 = vadd.f32 %v786_v5, %v719_v10 }
 0x304   :  { %v724_v14 = vsel %vm723_vm2, %v786_v5, %v720_v12 }
 0x305   :  { %v729_v15 = vsel %vm726_vm3, %v728_v53, %v724_v14 }
 0x306   :  { %v764_v16 = vsel %vm763_vm4, %v729_v15, 0.0 }
 0x307   :  { %767 = vst [vmem:[%s1313_s9] sm:$0xff] %v764_v16 }
 0x367   :  { %v681_v17 = vpop.f32.mrf.mxu3 }
 0x368   :  { %v682_v19 = vadd.f32 %v681_v17, %v642_v62 }
 0x36a   :  { %v776_v20 = vmul.f32 -1.442695, %v682_v19 }
 0x36c   :  { %787 = vpow2.f32 %v776_v20 }
 0x372   :  { %v788_v21 = vpop.eup %787 }
 0x373   :  { %v714_v24 = vadd.f32 1.0, %v788_v21 }
 0x375   :  { %789 = vrcp.f32 %v714_v24  ;;  %v742_v28 = vand.u32 2147483648, %v714_v24  ;;  %vm736_vm5 = vweird.f32 %v714_v24  ;;  %v740_v33 = vand.u32 2147483647, %v714_v24 }
 0x377   :  { %v743_v37 = vor.u32 1.1754944e-38, %v742_v28  ;;  %vm741_vm8 = vcmp.eq.f32.partialorder %v740_v33, 8.507059e+37 }
 0x37b   :  { %v790_v25 = vpop.eup %789 }
 0x37c   :  { %v732_v26 = vmul.f32 %v790_v25, %v714_v24  ;;  %vm737_vm6 = vweird.f32 %v790_v25 }
 0x37d   :  { %vm738_vm7 = vmor %vm736_vm5, %vm737_vm6 }
 0x37e   :  { %v733_v31 = vsub.f32 1.0, %v732_v26 }
 0x37f   :  { %v701_v48 = vpop.f32.mrf.mxu3 }
 0x380   :  { %v702_v29 = vadd.f32 %v701_v48, %v642_v62  ;;  %v734_v36 = vmul.f32 %v790_v25, %v733_v31 }
 0x382   :  { %v777_v35 = vmul.f32 -1.442695, %v702_v29  ;;  %v735_v39 = vadd.f32 %v790_v25, %v734_v36 }
 0x384   :  { %791 = vpow2.f32 %v777_v35  ;;  %v739_v40 = vsel %vm738_vm7, %v790_v25, %v735_v39 }
 0x385   :  { %v744_v41 = vsel %vm741_vm8, %v743_v37, %v739_v40 }
 0x386   :  { %v765_v38 = vsel %vm763_vm4, %v744_v41, 0.0 }
 0x387   :  { %768 = vst [vmem:[%s1313_s9 + $0x8] sm:$0xff] %v765_v38 }
 0x38a   :  { %v792_v43 = vpop.eup %791 }
 0x38b   :  { %v715_v44 = vadd.f32 1.0, %v792_v43 }
 0x38d   :  { %793 = vrcp.f32 %v715_v44  ;;  %v757_v47 = vand.u32 2147483648, %v715_v44  ;;  %v755_v50 = vand.u32 2147483647, %v715_v44  ;;  %vm751_vm10 = vweird.f32 %v715_v44 }
 0x38f   :  { %v758_v52 = vor.u32 1.1754944e-38, %v757_v47  ;;  %vm756_vm12 = vcmp.eq.f32.partialorder %v755_v50, 8.507059e+37 }
 0x393   :  { %v794_v45 = vpop.eup %793 }
 0x394   :  { %v747_v46 = vmul.f32 %v794_v45, %v715_v44  ;;  %vm752_vm9 = vweird.f32 %v794_v45 }
 0x395   :  { %vm753_vm11 = vmor %vm751_vm10, %vm752_vm9 }
 0x396   :  { %v748_v34 = vsub.f32 1.0, %v747_v46 }
 0x398   :  { %v749_v30 = vmul.f32 %v794_v45, %v748_v34 }
 0x39a   :  { %v750_v51 = vadd.f32 %v794_v45, %v749_v30 }
 0x39c   :  { %v754_v54 = vsel %vm753_vm11, %v794_v45, %v750_v51 }
 0x39d   :  { %v759_v49 = vsel %vm756_vm12, %v758_v52, %v754_v54 }
 0x39e   :  { %v766_v27 = vsel %vm763_vm4, %v759_v49, 0.0 }
 0x39f   :  { %770 = vst.msk [vmem:[%s1313_s9 + $0x10] sm:$0xff] %vm769_vm13, %v766_v27 }

</bundles_post_ra>
